<compile_context>
chip_gen: v7x
topology: tpu7x:2x2x1
jax: 0.10.0
libtpu: 0.0.40
codegen_flags: <defaults>
</compile_context>

<pallas_src>
import functools

import jax
import jax.numpy as jnp
from jax import lax
from jax.experimental import pallas as pl
from jax.experimental.pallas import tpu as pltpu

LANE = 128
SUBLANE = 8
MAX_TILE_ROWS = 8192   # 8192*128*4 B = 4 MiB per f32 input buffer
CHUNK_ROWS = 256       # inner-loop chunk (32 f32 vregs per loaded value)


def _cdiv(a, b):
    return (a + b - 1) // b


def _round_up(a, b):
    return _cdiv(a, b) * b


def _num_tensorcores():
    """2 on v7x (2 TensorCores per chip), else 1 (v5e / v6e are single-TC)."""
    try:
        kind = jax.devices()[0].device_kind.lower()
    except Exception:
        return 1
    return 2 if "v7" in kind else 1


def _focal_loss_kernel(x_ref, t_ref, acc_ref, *, alpha, gamma, binary_targets,
                       valid_rows, tile_rows, chunk_rows, steps):
    core = pl.program_id(0)
    step = pl.program_id(1)

    @pl.when(step == 0)
    def _init():
        acc_ref[...] = jnp.zeros_like(acc_ref)

    tile_row0 = (core * steps + step) * tile_rows  # first global row of this tile

    def _chunk_fl(r):
        """Per-element focal loss for rows [r, r+chunk_rows) of this tile."""
        p = x_ref[pl.ds(r, chunk_rows), :].astype(jnp.float32)
        t = t_ref[pl.ds(r, chunk_rows), :].astype(jnp.float32)
        if binary_targets:
            # t in {0,1}: one log per element; pt == q up to the -100 clamp (< f32 eps).
            omp = 1.0 - p
            pos = t > 0.5
            q = jnp.where(pos, p, omp)
            bce = -jnp.maximum(jnp.log(q), -100.0)
            one_m_pt = jnp.where(pos, omp, p)          # == 1 - q
        else:
            # General (soft-target) formula, matches PyTorch BCE with -100 log clamp.
            log_p = jnp.maximum(jnp.log(p), -100.0)
            log_1mp = jnp.maximum(jnp.log(1.0 - p), -100.0)
            bce = -(t * log_p + (1.0 - t) * log_1mp)
            one_m_pt = 1.0 - jnp.exp(-bce)

        g = float(gamma)
        if g == 0.0:
            fl = bce
        elif g == int(g) and g > 0:
            # Integer gamma: exponentiation by squaring, pure VPU multiplies.
            n = int(g)
            mod = None
            base = one_m_pt
            while n:
                if n & 1:
                    mod = base if mod is None else mod * base
                n >>= 1
                if n:
                    base = base * base
            fl = mod * bce
        else:
            # TODO(synk): non-integer gamma falls back to pow (EUP exp/log path).
            fl = jnp.maximum(one_m_pt, 0.0) ** g * bce

        if float(alpha) != 1.0:
            fl = jnp.float32(alpha) * fl
        return fl

    def _fold(fl):
        # Fold chunk into the resident (8,128) accumulator: pure vreg adds, no XLU.
        return fl.reshape(chunk_rows // SUBLANE, SUBLANE, LANE).sum(axis=0)

    n_chunks = tile_rows // chunk_rows

    # Fast path: whole tile lies inside the valid rows -> no masking at all.
    @pl.when(tile_row0 + tile_rows <= valid_rows)
    def _full():
        if n_chunks == 1:
            acc_ref[...] += _fold(_chunk_fl(0))
        else:
            def body(j, carry):
                r = pl.multiple_of(j * chunk_rows, chunk_rows)
                acc_ref[...] += _fold(_chunk_fl(r))
                return carry
            lax.fori_loop(0, n_chunks, body, 0)

    # Tail path: tile overruns the array; mask rows >= valid_rows (un-DMA'd garbage).
    @pl.when(tile_row0 + tile_rows > valid_rows)
    def _tail():
        row_in_chunk = lax.broadcasted_iota(jnp.int32, (chunk_rows, LANE), 0)

        def masked_add(r):
            fl = _chunk_fl(r)
            limit = valid_rows - tile_row0 - r           # scalar, may be <= 0
            acc_ref[...] += _fold(jnp.where(row_in_chunk < limit, fl, 0.0))

        if n_chunks == 1:
            masked_add(0)
        else:
            def body(j, carry):
                masked_add(pl.multiple_of(j * chunk_rows, chunk_rows))
                return carry
            lax.fori_loop(0, n_chunks, body, 0)


def focal_loss(inputs, targets, *, alpha=1.0, gamma=2.0, binary_targets=True):
    """Mean focal loss over all elements (logits=False, reduce=True).

    binary_targets=True enables the 1-log fast path (exact to f32 rounding for targets
    in {0,1}); pass binary_targets=False for soft targets to use the general formula.
    """
    assert inputs.shape == targets.shape
    total = int(inputs.size)
    assert total > 0

    x = inputs.reshape(-1)
    t = targets.reshape(-1)

    # Lane alignment: the lane-dense (rows,128) slab needs a multiple of 128 elements.
    # If unaligned, pad with (p=1, t=1) which contributes exactly 0 loss (BCE(1,1)=0).
    # This is the only remaining wrapper-side copy; aligned sizes are zero-copy.
    rem = total % LANE
    if rem:
        x = jnp.pad(x, (0, LANE - rem), constant_values=1)
        t = jnp.pad(t, (0, LANE - rem), constant_values=1)
    valid_rows = _cdiv(total, LANE)
    x2 = x.reshape(valid_rows, LANE)
    t2 = t.reshape(valid_rows, LANE)

    # Sublane granularity depends on dtype packing (f32: 8, bf16: 16, int8/bool: 32).
    min_rows = SUBLANE * max(
        max(1, 4 // max(1, jnp.dtype(x2.dtype).itemsize)),
        max(1, 4 // max(1, jnp.dtype(t2.dtype).itemsize)),
    )

    # Core split only on multi-TC chips and only when there is enough work.
    ncore = _num_tensorcores()
    if valid_rows < 2 * max(CHUNK_ROWS, min_rows):
        ncore = 1

    rows_per_core = _cdiv(valid_rows, ncore)
    tile_rows = min(MAX_TILE_ROWS, _round_up(rows_per_core, min_rows))
    chunk_rows = min(CHUNK_ROWS, tile_rows)
    tile_rows = _round_up(tile_rows, chunk_rows)
    steps = _cdiv(rows_per_core, tile_rows)

    kernel = functools.partial(
        _focal_loss_kernel,
        alpha=float(alpha), gamma=float(gamma), binary_targets=bool(binary_targets),
        valid_rows=valid_rows, tile_rows=tile_rows, chunk_rows=chunk_rows, steps=steps,
    )

    in_map = lambda c, i: (c * steps + i, 0)

    partials = pl.pallas_call(
        kernel,
        out_shape=jax.ShapeDtypeStruct((ncore * SUBLANE, LANE), jnp.float32),
        grid_spec=pltpu.PrefetchScalarGridSpec(
            num_scalar_prefetch=0,
            grid=(ncore, steps),
            in_specs=[
                pl.BlockSpec((tile_rows, LANE), in_map),
                pl.BlockSpec((tile_rows, LANE), in_map),
            ],
            out_specs=pl.BlockSpec((SUBLANE, LANE), lambda c, i: (c, 0)),
        ),
        compiler_params=pltpu.CompilerParams(
            dimension_semantics=("parallel", "arbitrary"),
            vmem_limit_bytes=32 * 1024 * 1024,
        ),
    )(x2, t2)

    # Tiny epilogue reduce; mean over the TRUE (unpadded) element count.
    return jnp.sum(partials) / jnp.float32(total)


def _focal_loss_ref(inputs, targets, alpha=1.0, gamma=2.0):
    p = inputs.astype(jnp.float32)
    t = targets.astype(jnp.float32)
    log_p = jnp.maximum(jnp.log(p), -100.0)
    log_1mp = jnp.maximum(jnp.log(1.0 - p), -100.0)
    bce = -(t * log_p + (1.0 - t) * log_1mp)
    pt = jnp.exp(-bce)
    return jnp.mean(alpha * (1.0 - pt) ** gamma * bce)


if __name__ == "__main__":
    key = jax.random.PRNGKey(0)
    k1, k2, k3, k4 = jax.random.split(key, 4)

    # inputs are probabilities (logits=False), targets are binary labels
    B, C, H, W = 2, 4, 16, 16
    inputs = jax.nn.sigmoid(jax.random.normal(k1, (B, C, H, W), jnp.float32))
    targets = (jax.random.uniform(k2, (B, C, H, W)) > 0.5).astype(jnp.float32)

    out = jax.block_until_ready(focal_loss(inputs, targets, alpha=1.0, gamma=2.0))
    ref = _focal_loss_ref(inputs, targets)
    assert jnp.allclose(out, ref, rtol=1e-5, atol=1e-6), (out, ref)

    # lane-unaligned size: exercises the minimal pad-to-128 + in-kernel masked tail path
    shp = (2, 3, 15, 17)
    inputs2 = jax.nn.sigmoid(jax.random.normal(k3, shp, jnp.float32))
    targets2 = (jax.random.uniform(k4, shp) > 0.5).astype(jnp.float32)
    out2 = jax.block_until_ready(focal_loss(inputs2, targets2))
    ref2 = _focal_loss_ref(inputs2, targets2)
    assert jnp.allclose(out2, ref2, rtol=1e-5, atol=1e-6), (out2, ref2)

    print("KERNEL_OK")
</pallas_src>

<mosaic_0001>
module attributes {stable_mosaic.version = 11 : i64} {
  func.func @_focal_loss_kernel(%arg0: i32, %arg1: i32, %arg2: memref<16x128xf32, #tpu.memory_space<vmem>>, %arg3: memref<16x128xf32, #tpu.memory_space<vmem>>, %arg4: memref<8x128xf32, #tpu.memory_space<vmem>>) attributes {dimension_semantics = [#tpu.dimension_semantics<parallel>, #tpu.dimension_semantics<arbitrary>], iteration_bounds = array<i64: 1, 1>, scalar_prefetch = 0 : i64, scratch_operands = 0 : i64, tpu.core_type = #tpu.core_type<tc>, window_params = [{transform_indices = @transform_0, window_bounds = array<i64: 16, 128>}, {transform_indices = @transform_1, window_bounds = array<i64: 16, 128>}, {transform_indices = @transform_2, window_bounds = array<i64: 8, 128>}]} {
    %c0_i32 = arith.constant 0 : i32
    %0 = arith.cmpi eq, %arg1, %c0_i32 : i32
    %1 = arith.extui %0 : i1 to i32
    %c0_i32_0 = arith.constant 0 : i32
    %2 = arith.cmpi ne, %1, %c0_i32_0 : i32
    scf.if %2 {
      %cst = arith.constant 0.000000e+00 : f32
      %14 = vector.broadcast %cst : f32 to vector<8x128xf32>
      %c0 = arith.constant 0 : index
      %c0_7 = arith.constant 0 : index
      %15 = vector.load %arg4[%c0, %c0_7] : memref<8x128xf32, #tpu.memory_space<vmem>>, vector<8x128xf32>
      tpu.vector_store %arg4[%c0, %c0_7], %14 {strides = array<i32>} : memref<8x128xf32, #tpu.memory_space<vmem>>, vector<8x128xf32>,
    } else {
    }
    %c1_i32 = arith.constant 1 : i32
    %3 = arith.muli %arg0, %c1_i32 : i32
    %4 = arith.addi %3, %arg1 : i32
    %c16_i32 = arith.constant 16 : i32
    %5 = arith.muli %4, %c16_i32 : i32
    %c16_i32_1 = arith.constant 16 : i32
    %6 = arith.addi %5, %c16_i32_1 : i32
    %c16_i32_2 = arith.constant 16 : i32
    %7 = arith.cmpi sle, %6, %c16_i32_2 : i32
    %8 = arith.extui %7 : i1 to i32
    %c0_i32_3 = arith.constant 0 : i32
    %9 = arith.cmpi ne, %8, %c0_i32_3 : i32
    scf.if %9 {
      %c0 = arith.constant 0 : index
      %c0_7 = arith.constant 0 : index
      %14 = vector.load %arg4[%c0, %c0_7] : memref<8x128xf32, #tpu.memory_space<vmem>>, vector<8x128xf32>
      %c0_8 = arith.constant 0 : index
      %c0_9 = arith.constant 0 : index
      %15 = vector.load %arg2[%c0_8, %c0_9] : memref<16x128xf32, #tpu.memory_space<vmem>>, vector<16x128xf32>
      %c0_10 = arith.constant 0 : index
      %c0_11 = arith.constant 0 : index
      %16 = vector.load %arg3[%c0_10, %c0_11] : memref<16x128xf32, #tpu.memory_space<vmem>>, vector<16x128xf32>
      %cst = arith.constant 1.000000e+00 : f32
      %17 = vector.broadcast %cst : f32 to vector<16x128xf32>
      %18 = arith.subf %17, %15 : vector<16x128xf32>
      %cst_12 = arith.constant 5.000000e-01 : f32
      %19 = vector.broadcast %cst_12 : f32 to vector<16x128xf32>
      %20 = arith.cmpf ogt, %16, %19 : vector<16x128xf32>
      %21 = arith.select %20, %15, %18 : vector<16x128xi1>, vector<16x128xf32>
      %22 = math.log %21 : vector<16x128xf32>
      %cst_13 = arith.constant -1.000000e+02 : f32
      %23 = vector.broadcast %cst_13 : f32 to vector<16x128xf32>
      %24 = arith.maximumf %22, %23 : vector<16x128xf32>
      %cst_14 = arith.constant 0.000000e+00 : f32
      %25 = vector.broadcast %cst_14 : f32 to vector<16x128xf32>
      %26 = arith.subf %25, %24 : vector<16x128xf32>
      %27 = arith.select %20, %18, %15 : vector<16x128xi1>, vector<16x128xf32>
      %28 = arith.mulf %27, %27 : vector<16x128xf32>
      %29 = arith.mulf %28, %26 : vector<16x128xf32>
      %30 = vector.shape_cast %29 : vector<16x128xf32> to vector<2x8x128xf32>
      %cst_15 = arith.constant dense<0.000000e+00> : vector<8x128xf32>
      %31 = vector.multi_reduction <add>, %30, %cst_15 [0] : vector<2x8x128xf32> to vector<8x128xf32>
      %32 = arith.addf %14, %31 : vector<8x128xf32>
      %c0_16 = arith.constant 0 : index
      %c0_17 = arith.constant 0 : index
      %33 = vector.load %arg4[%c0_16, %c0_17] : memref<8x128xf32, #tpu.memory_space<vmem>>, vector<8x128xf32>
      tpu.vector_store %arg4[%c0_16, %c0_17], %32 {strides = array<i32>} : memref<8x128xf32, #tpu.memory_space<vmem>>, vector<8x128xf32>,
    } else {
    }
    %c16_i32_4 = arith.constant 16 : i32
    %10 = arith.addi %5, %c16_i32_4 : i32
    %c16_i32_5 = arith.constant 16 : i32
    %11 = arith.cmpi sgt, %10, %c16_i32_5 : i32
    %12 = arith.extui %11 : i1 to i32
    %c0_i32_6 = arith.constant 0 : i32
    %13 = arith.cmpi ne, %12, %c0_i32_6 : i32
    scf.if %13 {
      %14 = tpu.iota {dimensions = array<i32: 0>} : vector<16x128xi32>
      %c0 = arith.constant 0 : index
      %c0_7 = arith.constant 0 : index
      %15 = vector.load %arg2[%c0, %c0_7] : memref<16x128xf32, #tpu.memory_space<vmem>>, vector<16x128xf32>
      %c0_8 = arith.constant 0 : index
      %c0_9 = arith.constant 0 : index
      %16 = vector.load %arg3[%c0_8, %c0_9] : memref<16x128xf32, #tpu.memory_space<vmem>>, vector<16x128xf32>
      %cst = arith.constant 1.000000e+00 : f32
      %17 = vector.broadcast %cst : f32 to vector<16x128xf32>
      %18 = arith.subf %17, %15 : vector<16x128xf32>
      %cst_10 = arith.constant 5.000000e-01 : f32
      %19 = vector.broadcast %cst_10 : f32 to vector<16x128xf32>
      %20 = arith.cmpf ogt, %16, %19 : vector<16x128xf32>
      %21 = arith.select %20, %15, %18 : vector<16x128xi1>, vector<16x128xf32>
      %22 = math.log %21 : vector<16x128xf32>
      %cst_11 = arith.constant -1.000000e+02 : f32
      %23 = vector.broadcast %cst_11 : f32 to vector<16x128xf32>
      %24 = arith.maximumf %22, %23 : vector<16x128xf32>
      %cst_12 = arith.constant 0.000000e+00 : f32
      %25 = vector.broadcast %cst_12 : f32 to vector<16x128xf32>
      %26 = arith.subf %25, %24 : vector<16x128xf32>
      %27 = arith.select %20, %18, %15 : vector<16x128xi1>, vector<16x128xf32>
      %28 = arith.mulf %27, %27 : vector<16x128xf32>
      %29 = arith.mulf %28, %26 : vector<16x128xf32>
      %c16_i32_13 = arith.constant 16 : i32
      %30 = arith.subi %c16_i32_13, %5 : i32
      %c0_i32_14 = arith.constant 0 : i32
      %31 = arith.subi %30, %c0_i32_14 : i32
      %c0_15 = arith.constant 0 : index
      %c0_16 = arith.constant 0 : index
      %32 = vector.load %arg4[%c0_15, %c0_16] : memref<8x128xf32, #tpu.memory_space<vmem>>, vector<8x128xf32>
      %33 = vector.broadcast %31 : i32 to vector<16x128xi32>
      %34 = arith.cmpi slt, %14, %33 : vector<16x128xi32>
      %cst_17 = arith.constant 0.000000e+00 : f32
      %35 = vector.broadcast %cst_17 : f32 to vector<16x128xf32>
      %36 = arith.select %34, %29, %35 : vector<16x128xi1>, vector<16x128xf32>
      %37 = vector.shape_cast %36 : vector<16x128xf32> to vector<2x8x128xf32>
      %cst_18 = arith.constant dense<0.000000e+00> : vector<8x128xf32>
      %38 = vector.multi_reduction <add>, %37, %cst_18 [0] : vector<2x8x128xf32> to vector<8x128xf32>
      %39 = arith.addf %32, %38 : vector<8x128xf32>
      %c0_19 = arith.constant 0 : index
      %c0_20 = arith.constant 0 : index
      %40 = vector.load %arg4[%c0_19, %c0_20] : memref<8x128xf32, #tpu.memory_space<vmem>>, vector<8x128xf32>
      tpu.vector_store %arg4[%c0_19, %c0_20], %39 {strides = array<i32>} : memref<8x128xf32, #tpu.memory_space<vmem>>, vector<8x128xf32>,
    } else {
    }
    return
  }
  func.func @transform_0(%arg0: i32, %arg1: i32) -> (i32, i32) {
    %c1_i32 = arith.constant 1 : i32
    %0 = arith.muli %arg0, %c1_i32 : i32
    %1 = arith.addi %0, %arg1 : i32
    %c0_i32 = arith.constant 0 : i32
    %c0_i32_0 = arith.constant 0 : i32
    return %1, %c0_i32 : i32, i32
  }
  func.func @transform_1(%arg0: i32, %arg1: i32) -> (i32, i32) {
    %c1_i32 = arith.constant 1 : i32
    %0 = arith.muli %arg0, %c1_i32 : i32
    %1 = arith.addi %0, %arg1 : i32
    %c0_i32 = arith.constant 0 : i32
    %c0_i32_0 = arith.constant 0 : i32
    return %1, %c0_i32 : i32, i32
  }
  func.func @transform_2(%arg0: i32, %arg1: i32) -> (i32, i32) {
    %c0_i32 = arith.constant 0 : i32
    %c0_i32_0 = arith.constant 0 : i32
    return %arg0, %c0_i32 : i32, i32
  }
}

</mosaic_0001>

<bundles_post_ra>
// kernel: tpu_custom_call.1
= control target key start
LH: loop header
LB: loop body
LE: loop exit
PB: predicated region body
PF: predicated region fallthrough
CT: control target
= control target key end

     0   :  { %7 = vsyncpa [#allocation3], 0  ;;  %s287_s0 = inlined_call_operand.hbm [shape: f32[16,128], index: 0, kind: input, shape index: {}]   ;;  %s288_s1 = inlined_call_operand.hbm [shape: f32[16,128], index: 1, kind: input, shape index: {}]   ;;  %s289_s2 = inlined_call_operand.hbm [shape: f32[8,128], index: 2, kind: output, shape index: {}]  }
   0x1   :  { %8 = vsyncpa [#allocation6], 0 }
   0x2   :  { %9 = vsyncpa [#allocation4], 0  ;;  %s231_s9 = smov [#allocation2]   ;;  %s159_s13 = scalar_lea.hbm %s287_s0, 256 }
   0x3   :  { %s19_s10 = sshll.u32 %s231_s9, 4  ;;  %p160_p0 = scmp.ne.s32.totalorder %s287_s0, %s159_s13  ;;  %s20_s10 = int_to_ptr.vmem [resolvable:$true] %s19_s10 }
   0x4   :  { %p163_p1 = scmp.lt.u32.totalorder %s159_s13, %s287_s0 }
   0x6   :  { %p165_p2 = pnand %p163_p1, %p160_p0 }
   0x8   :  { %168 = shalt.err (!%p165_p2)
}
   0x9   :  { %s169_s18 = scalar_lea.vmem %s20_s10, 256  ;;  %p174_p4 = scmp.lt.s32.totalorder %s20_s10, %s20_s10 }
   0xa   :  { %p170_p3 = scmp.ne.s32.totalorder %s20_s10, %s169_s18  ;;  %p175_p5 = scmp.lt.s32.totalorder %s169_s18, %s169_s18 }
   0xc   :  { %p176_p6 = por %p175_p5, %p174_p4 }
   0xe   :  { %p177_p7 = pnand %p176_p6, %p170_p3 }
  0x10   :  { %180 = shalt.err (!%p177_p7)
}
  0x11   :  { %s232_s19 = smov 128   ;;  %s233_s20 = smov 8  }
  0x12   :  { %25 = dma.hbm_to_vmem [thread:$0]  %s287_s0, 256, %s20_s10, [#allocation3], %s232_s19, %s232_s19, %s233_s20  }
  0x13   :  { %s234_s23 = smov [#allocation5]   ;;  %s181_s27 = scalar_lea.hbm %s288_s1, 256 }
  0x14   :  { %s35_s24 = sshll.u32 %s234_s23, 4  ;;  %p182_p8 = scmp.ne.s32.totalorder %s288_s1, %s181_s27  ;;  %s36_s24 = int_to_ptr.vmem [resolvable:$true] %s35_s24 }
  0x15   :  { %p185_p9 = scmp.lt.u32.totalorder %s181_s27, %s288_s1 }
  0x17   :  { %p187_p10 = pnand %p185_p9, %p182_p8 }
  0x19   :  { %190 = shalt.err (!%p187_p10)
}
  0x1a   :  { %s191_s4 = scalar_lea.vmem %s36_s24, 256  ;;  %p196_p12 = scmp.lt.s32.totalorder %s36_s24, %s36_s24 }
  0x1b   :  { %p192_p11 = scmp.ne.s32.totalorder %s36_s24, %s191_s4  ;;  %p197_p13 = scmp.lt.s32.totalorder %s191_s4, %s191_s4 }
  0x1d   :  { %p198_p0 = por %p197_p13, %p196_p12 }
  0x1f   :  { %p199_p1 = pnand %p198_p0, %p192_p11 }
  0x21   :  { %202 = shalt.err (!%p199_p1)
}
  0x22   :  { %41 = dma.hbm_to_vmem [thread:$0]  %s288_s1, 256, %s36_s24, [#allocation6], %s232_s19, %s232_s19, %s233_s20  }
  0x23   :  { %225 = dma.done.wait [#allocation3], 256  }
  0x24   :  { %226 = vsyncadd [#allocation3], 4294967040 }
  0x25   :  { %227 = dma.done.wait [#allocation6], 256  }
  0x26   :  { %228 = vsyncadd [#allocation6], 4294967040  ;;  %v65_v0 = vld [vmem:[#allocation2] sm:$0xff]  ;;  %v66_v1 = vld [vmem:[#allocation2 + $0x8] sm:$0xff]  ;;  %s235_s1 = smov [#allocation7]  }
  0x27   :  { %v67_v2 = vld [vmem:[#allocation5] sm:$0xff]  ;;  %v68_v3 = vld [vmem:[#allocation5 + $0x8] sm:$0xff]  ;;  %v69_v4 = vsub.f32 1.0, %v65_v0  ;;  %v70_v5 = vsub.f32 1.0, %v66_v1  ;;  %s139_s6 = sshll.u32 %s235_s1, 4  ;;  %s140_s6 = int_to_ptr.vmem [resolvable:$true] %s139_s6 }
  0x28   :  { %vm71_vm0 = vcmp.gt.f32.partialorder %v67_v2, 0.5  ;;  %vm72_vm1 = vcmp.gt.f32.partialorder %v68_v3, 0.5  ;;  %s203_s7 = scalar_lea.vmem %s140_s6, 128  ;;  %p208_p3 = scmp.lt.s32.totalorder %s140_s6, %s140_s6 }
  0x29   :  { %v73_v6 = vsel %vm71_vm0, %v65_v0, %v69_v4  ;;  %v74_v7 = vsel %vm72_vm1, %v66_v1, %v70_v5  ;;  %v83_v9 = vsel %vm71_vm0, %v69_v4, %v65_v0  ;;  %v84_v12 = vsel %vm72_vm1, %v70_v5, %v66_v1  ;;  %p204_p2 = scmp.ne.s32.totalorder %s140_s6, %s203_s7  ;;  %p209_p4 = scmp.lt.s32.totalorder %s203_s7, %s203_s7 }
  0x2a   :  { %155 = vlog2.f32 %v73_v6  ;;  %v85_v15 = vmul.f32 %v83_v9, %v83_v9  ;;  %v86_v17 = vmul.f32 %v84_v12, %v84_v12 }
  0x2b   :  { %157 = vlog2.f32 %v74_v7  ;;  %p210_p5 = por %p209_p4, %p208_p3 }
  0x2d   :  { %p211_p6 = pnand %p210_p5, %p204_p2 }
  0x34   :  { %v156_v8 = vpop.eup %155 }
  0x35   :  { %v158_v10 = vpop.eup %157  ;;  %v76_v11 = vmul.f32 0.6931472, %v156_v8 }
  0x36   :  { %v78_v13 = vmul.f32 0.6931472, %v158_v10 }
  0x37   :  { %v79_v14 = vmax.f32 %v76_v11, -100.0 }
  0x38   :  { %v80_v16 = vmax.f32 %v78_v13, -100.0 }
  0x39   :  { %v81_v18 = vsub.f32 0.0, %v79_v14 }
  0x3a   :  { %v82_v19 = vsub.f32 0.0, %v80_v16 }
  0x3b   :  { %v87_v20 = vmul.f32 %v85_v15, %v81_v18 }
  0x3c   :  { %v88_v21 = vmul.f32 %v86_v17, %v82_v19 }
  0x3e   :  { %v89_v22 = vadd.f32 %v88_v21, %v87_v20 }
  0x40   :  { %91 = vst [vmem:[#allocation7] sm:$0xff] %v89_v22 }
  0x41   :  { %214 = shalt.err (!%p211_p6)
}
  0x42   :  { %s215_s10 = scalar_lea.hbm %s289_s2, 128 }
  0x43   :  { %p216_p7 = scmp.ne.s32.totalorder %s289_s2, %s215_s10  ;;  %p219_p8 = scmp.lt.u32.totalorder %s215_s10, %s289_s2 }
  0x45   :  { %p221_p9 = pnand %p219_p8, %p216_p7 }
  0x47   :  { %224 = shalt.err (!%p221_p9)
}
  0x48   :  { %142 = dma.vmem_to_hbm [thread:$0]  %s140_s6, 128, %s289_s2, [#allocation4]  }
  0x49   :  { %229 = dma.done.wait [#allocation4], 128  }
  0x4a   :  { %230 = vsyncadd [#allocation4], 4294967168 }
  0x4b   :  { %146 = vsyncpa [#allocation3], 1 }
  0x4c   :  { %147 = vsyncpa [#allocation6], 1 }
  0x4d   :  { %148 = vsyncpa [#allocation4], 1 }

</bundles_post_ra>
